<compile_context>
chip_gen: v7x
topology: tpu7x:2x2x1
jax: 0.10.0
libtpu: 0.0.40
codegen_flags: <defaults>
</compile_context>

<pallas_src>
import functools

import jax
import jax.numpy as jnp
from jax.experimental import pallas as pl
from jax.experimental.pallas import tpu as pltpu

NEG_SLOPE = 0.01  # nn.LeakyReLU default


def _leaky(x):
    return jnp.where(x >= 0, x, NEG_SLOPE * x)


# -----------------------------------------------------------------------------
# Kernel: everything stays in the lane-dense "wide" layout [rows, N*D].
# -----------------------------------------------------------------------------
def att_kernel(u_ref, iw_ref, wa_bd_ref, ba_w_ref, swh_ref, expand_ref,
               pool_ref, w2_bd_ref, w12r_ref, b12w_ref, tile_ref, out_ref,
               *, approx_recip):
    f32 = jnp.float32
    u2 = u_ref[...]      # [TB, D]    user embedding
    i_w = iw_ref[...]    # [TB, N*D]  item embeddings, lane-dense

    # --- Att_add_mp: additive attention over the item axis ------------------
    # hid[:, j*D:(j+1)*D] = LeakyReLU(i_em[:, j, :] @ Wa + ba)   (block-diag Wa)
    hid = _leaky(jnp.dot(i_w, wa_bd_ref[...], preferred_element_type=f32)
                 + ba_w_ref[...])                                     # [TB, N*D]
    # score[:, j] = hid_j . wh   (bh omitted: scalar shift is a softmax no-op)
    scores = jnp.dot(hid, swh_ref[...], preferred_element_type=f32)   # [TB, N]

    # softmax over the item axis
    scores = scores - jnp.max(scores, axis=-1, keepdims=True)
    ex = jnp.exp(scores)
    den = jnp.sum(ex, axis=-1, keepdims=True)
    inv = pl.reciprocal(den, approx=True) if approx_recip else 1.0 / den
    alphas = ex * inv                                                 # [TB, N]

    # att_value[b, :] = sum_j alphas[b, j] * i_em[b, j, :]
    alphas_w = jnp.dot(alphas, expand_ref[...],
                       preferred_element_type=f32)                    # [TB, N*D]
    att_value = jnp.dot(i_w * alphas_w, pool_ref[...],
                        preferred_element_type=f32)                   # [TB, D]

    # pooled path mp_w1 -> mp_w2, folded (W1@W2) and pre-tiled across items
    av_w = jnp.dot(att_value, w12r_ref[...],
                   preferred_element_type=f32) + b12w_ref[...]        # [TB, N*D]

    # per-item path of mp_w2: i_em @ W2 (block-diag keeps it per item)
    att_ii = jnp.dot(i_w, w2_bd_ref[...], preferred_element_type=f32) + av_w

    # ui = u_em * i_em, user row tiled across items on the MXU
    u_w = jnp.dot(u2, tile_ref[...], preferred_element_type=f32)      # [TB, N*D]

    out_ref[...] = _leaky(u_w * i_w + att_ii).astype(out_ref.dtype)


# -----------------------------------------------------------------------------
# Sizing helpers (VMEM accounting includes weights + temporaries).
# -----------------------------------------------------------------------------
def _rup(x, m):
    return ((x + m - 1) // m) * m


def _tile_bytes(rows, cols, itemsize=4):
    return _rup(rows, 8) * _rup(cols, 128) * itemsize


def _vmem_bytes(tb, n, d):
    nd = n * d
    io = 2 * (_tile_bytes(tb, d) + 2 * _tile_bytes(tb, nd))        # u, items, out (double-buffered)
    weights = (2 * _tile_bytes(nd, nd)                             # Wa_bd, W2_bd (single-buffered)
               + _tile_bytes(nd, n) + _tile_bytes(n, nd) + _tile_bytes(nd, d)
               + 2 * _tile_bytes(d, nd) + 2 * _tile_bytes(1, nd))
    temps = 6 * _tile_bytes(tb, nd)                                # hid / alphas_w / av_w / att_ii / u_w / prod
    return io + weights + temps


def _chip_info():
    """Return (physical VMEM bytes per TensorCore, TensorCores per device)."""
    kind = ""
    try:
        kind = (jax.devices()[0].device_kind or "").lower()
    except Exception:
        pass
    if "v5 lite" in kind or "v5e" in kind or "v5lite" in kind:
        return 128 << 20, 1
    if "v6" in kind:
        return 128 << 20, 1
    if "v7" in kind or "tpu7" in kind:
        return 64 << 20, 2
    return 64 << 20, 2  # unknown chip: assume the tighter (v7x-like) budget


def _choose_tb(b, n, d, num_tc, budget_bytes):
    # TB must divide B and keep the lane-dense blocks legal: TB % 8 == 0 or TB == B.
    cands = [t for t in range(1, b + 1) if b % t == 0 and (t % 8 == 0 or t == b)]
    fits = [t for t in cands if _vmem_bytes(t, n, d) <= budget_bytes]
    pool = fits if fits else [min(cands)]
    if num_tc > 1:
        # even work split across TensorCores (grid steps a multiple of num_tc)
        multi = [t for t in pool if (b // t) >= num_tc and (b // t) % num_tc == 0]
        if multi:
            return max(multi)
    return max(pool)


# -----------------------------------------------------------------------------
# Wrapper
# -----------------------------------------------------------------------------
def att0_16_104_forward(embeddings, params, *, approx_recip=True):
    B, Np1, D = embeddings.shape
    assert Np1 >= 2, "need at least one item slot"
    N = Np1 - 1
    ND = N * D
    wa, ba, wh, bh, w1, b1, w2, b2 = params
    del bh  # adding a scalar to every logit cannot change the softmax

    phys_vmem, num_tc = _chip_info()
    # Block-diagonal weights scale as (N*D)^2; keep them a small VMEM fraction.
    # TODO(synk): narrow [B, N, D]-blocked fallback for very large N*em_dim.
    assert 2 * (ND ** 2) * 4 <= phys_vmem // 4, "N*em_dim too large for this layout"

    f32 = jnp.float32
    eye_n = jnp.eye(N, dtype=f32)
    eye_d = jnp.eye(D, dtype=f32)

    # Data, presented lane-dense (host-side reshape is layout plumbing only).
    u = embeddings[:, 0, :].astype(f32)                          # [B, D]
    items_w = embeddings[:, 1:, :].astype(f32).reshape(B, ND)    # [B, N*D]

    # Constant matrices so every per-item linear map is a plain MXU matmul.
    wa_bd = jnp.kron(eye_n, wa)                        # [ND, ND] block-diag Wa
    w2_bd = jnp.kron(eye_n, w2)                        # [ND, ND] block-diag W2
    ba_w = jnp.tile(ba, (1, N))                        # [1, ND]
    swh = jnp.kron(eye_n, wh.T)                        # [ND, N]  per-item score weight
    expand = jnp.kron(eye_n, jnp.ones((1, D), f32))    # [N, ND]  alpha_j -> D lanes
    pool = jnp.kron(jnp.ones((N, 1), f32), eye_d)      # [ND, D]  sum over items
    tile_r = jnp.kron(jnp.ones((1, N), f32), eye_d)    # [D, ND]  tile a D-row N times
    w12r = (w1 @ w2) @ tile_r                          # [D, ND]  folded mp_w1->mp_w2, tiled
    b12w = jnp.tile(b1 @ w2 + b2, (1, N))              # [1, ND]

    budget = (phys_vmem * 2) // 3
    TB = _choose_tb(B, N, D, num_tc, budget)
    grid = (B // TB,)

    need = _vmem_bytes(TB, N, D)
    vmem_limit = int(min((phys_vmem * 3) // 4, max(2 * need, 32 << 20)))

    def _data_spec(cols):
        return pl.BlockSpec((TB, cols), lambda b: (b, 0))

    def _const_spec(shape):
        # grid-invariant operand: single-buffer it (no double-buffered copy)
        return pl.BlockSpec(shape, lambda b: (0,) * len(shape),
                            pipeline_mode=pl.Buffered(1))

    grid_spec = pltpu.PrefetchScalarGridSpec(
        num_scalar_prefetch=0,
        grid=grid,
        in_specs=[
            _data_spec(D),            # user embedding      [B, D]
            _data_spec(ND),           # item embeddings     [B, N*D] (lane-dense)
            _const_spec((ND, ND)),    # Wa block-diagonal
            _const_spec((1, ND)),     # ba tiled
            _const_spec((ND, N)),     # additive-attention score weights
            _const_spec((N, ND)),     # alpha expansion
            _const_spec((ND, D)),     # item pooling
            _const_spec((ND, ND)),    # W2 block-diagonal
            _const_spec((D, ND)),     # W1@W2 tiled
            _const_spec((1, ND)),     # b1@W2 + b2 tiled
            _const_spec((D, ND)),     # user tiling
        ],
        out_specs=pl.BlockSpec((TB, ND), lambda b: (b, 0)),
    )

    out_w = pl.pallas_call(
        functools.partial(att_kernel, approx_recip=approx_recip),
        out_shape=jax.ShapeDtypeStruct((B, ND), f32),
        grid_spec=grid_spec,
        compiler_params=pltpu.CompilerParams(
            dimension_semantics=("parallel",),
            vmem_limit_bytes=vmem_limit,
        ),
    )(u, items_w, wa_bd, ba_w, swh, expand, pool, w2_bd, w12r, b12w, tile_r)

    return out_w.reshape(B, N, D)


# -----------------------------------------------------------------------------
# Pure-JAX reference mirroring the PyTorch forward (eval mode).
# -----------------------------------------------------------------------------
def reference_forward(embeddings, params):
    wa, ba, wh, bh, w1, b1, w2, b2 = params
    u_em = embeddings[:, 0:1, :]                                  # [B, 1, D]
    i_em = embeddings[:, 1:, :]                                   # [B, N, D]
    ui = u_em * i_em
    hid = _leaky(i_em @ wa + ba)
    score = jnp.sum(hid * wh, axis=-1, keepdims=True) + bh[0, 0]  # [B, N, 1]
    alphas = jax.nn.softmax(score, axis=-2)
    att_value = jnp.sum(alphas * i_em, axis=-2)                   # [B, D]
    att_value = att_value @ w1 + b1
    att_ii = (att_value[:, None, :] + i_em) @ w2 + b2             # [B, N, D]
    return _leaky(ui + att_ii)


def make_params(key, D):
    ks = jax.random.split(key, 8)
    scale = 1.0 / jnp.sqrt(D)
    wa = jax.random.normal(ks[0], (D, D), jnp.float32) * scale
    ba = jax.random.normal(ks[1], (1, D), jnp.float32) * 0.1
    wh = jax.random.normal(ks[2], (1, D), jnp.float32) * scale
    bh = jax.random.normal(ks[3], (1, 1), jnp.float32) * 0.1
    w1 = jax.random.normal(ks[4], (D, D), jnp.float32) * scale
    b1 = jax.random.normal(ks[5], (1, D), jnp.float32) * 0.1
    w2 = jax.random.normal(ks[6], (D, D), jnp.float32) * scale
    b2 = jax.random.normal(ks[7], (1, D), jnp.float32) * 0.1
    return (wa, ba, wh, bh, w1, b1, w2, b2)


if __name__ == "__main__":
    key = jax.random.PRNGKey(0)
    k_emb, k_par = jax.random.split(key)

    B, N, D = 8, 8, 32  # batch, items, em_dim
    embeddings = jax.random.normal(k_emb, (B, N + 1, D), jnp.float32)
    params = make_params(k_par, D)

    ref = reference_forward(embeddings, params)

    # Exact-reciprocal softmax: tight tolerance (catches real bugs).
    out_exact = jax.block_until_ready(
        att0_16_104_forward(embeddings, params, approx_recip=False))
    assert out_exact.shape == (B, N, D)
    err = float(jnp.max(jnp.abs(out_exact - ref)))
    assert jnp.allclose(out_exact, ref, rtol=1e-3, atol=1e-3), (
        f"exact-mode mismatch vs reference (max abs err {err})")

    # Default fast path (EUP approximate reciprocal): loose tolerance.
    out_fast = jax.block_until_ready(
        att0_16_104_forward(embeddings, params, approx_recip=True))
    err = float(jnp.max(jnp.abs(out_fast - ref)))
    assert jnp.allclose(out_fast, ref, rtol=1e-2, atol=1e-2), (
        f"fast-mode mismatch vs reference (max abs err {err})")

    print("KERNEL_OK")
</pallas_src>

<mosaic_0001>
module attributes {stable_mosaic.version = 11 : i64} {
  func.func @att_kernel(%arg0: i32, %arg1: memref<8x32xf32, #tpu.memory_space<vmem>>, %arg2: memref<8x256xf32, #tpu.memory_space<vmem>>, %arg3: memref<256x256xf32, #tpu.memory_space<vmem>>, %arg4: memref<1x256xf32, #tpu.memory_space<vmem>>, %arg5: memref<256x8xf32, #tpu.memory_space<vmem>>, %arg6: memref<8x256xf32, #tpu.memory_space<vmem>>, %arg7: memref<256x32xf32, #tpu.memory_space<vmem>>, %arg8: memref<256x256xf32, #tpu.memory_space<vmem>>, %arg9: memref<32x256xf32, #tpu.memory_space<vmem>>, %arg10: memref<1x256xf32, #tpu.memory_space<vmem>>, %arg11: memref<32x256xf32, #tpu.memory_space<vmem>>, %arg12: memref<8x256xf32, #tpu.memory_space<vmem>>) attributes {dimension_semantics = [#tpu.dimension_semantics<parallel>], iteration_bounds = array<i64: 1>, scalar_prefetch = 0 : i64, scratch_operands = 0 : i64, tpu.core_type = #tpu.core_type<tc>, window_params = [{transform_indices = @transform_0, window_bounds = array<i64: 8, 32>}, {transform_indices = @transform_1, window_bounds = array<i64: 8, 256>}, {pipeline_mode = #tpu.pipeline_mode<synchronous>, transform_indices = @transform_2, window_bounds = array<i64: 256, 256>}, {pipeline_mode = #tpu.pipeline_mode<synchronous>, transform_indices = @transform_3, window_bounds = array<i64: 1, 256>}, {pipeline_mode = #tpu.pipeline_mode<synchronous>, transform_indices = @transform_4, window_bounds = array<i64: 256, 8>}, {pipeline_mode = #tpu.pipeline_mode<synchronous>, transform_indices = @transform_5, window_bounds = array<i64: 8, 256>}, {pipeline_mode = #tpu.pipeline_mode<synchronous>, transform_indices = @transform_6, window_bounds = array<i64: 256, 32>}, {pipeline_mode = #tpu.pipeline_mode<synchronous>, transform_indices = @transform_7, window_bounds = array<i64: 256, 256>}, {pipeline_mode = #tpu.pipeline_mode<synchronous>, transform_indices = @transform_8, window_bounds = array<i64: 32, 256>}, {pipeline_mode = #tpu.pipeline_mode<synchronous>, transform_indices = @transform_9, window_bounds = array<i64: 1, 256>}, {pipeline_mode = #tpu.pipeline_mode<synchronous>, transform_indices = @transform_10, window_bounds = array<i64: 32, 256>}, {transform_indices = @transform_11, window_bounds = array<i64: 8, 256>}]} {
    %c0 = arith.constant 0 : index
    %c0_0 = arith.constant 0 : index
    %0 = vector.load %arg1[%c0, %c0_0] : memref<8x32xf32, #tpu.memory_space<vmem>>, vector<8x32xf32>
    %c0_1 = arith.constant 0 : index
    %c0_2 = arith.constant 0 : index
    %1 = vector.load %arg2[%c0_1, %c0_2] : memref<8x256xf32, #tpu.memory_space<vmem>>, vector<8x256xf32>
    %c0_3 = arith.constant 0 : index
    %c0_4 = arith.constant 0 : index
    %2 = vector.load %arg3[%c0_3, %c0_4] : memref<256x256xf32, #tpu.memory_space<vmem>>, vector<256x256xf32>
    %cst = arith.constant dense<0.000000e+00> : vector<8x256xf32>
    %3 = tpu.matmul %1, %2, %cst {dimension_numbers = #tpu.dot_dimension_numbers<[1], [0], [0], [1], [0, 0, 1, 1], [], []>} : vector<8x256xf32>, vector<256x256xf32>, vector<8x256xf32> -> vector<8x256xf32>
    %c0_5 = arith.constant 0 : index
    %c0_6 = arith.constant 0 : index
    %4 = vector.load %arg4[%c0_5, %c0_6] : memref<1x256xf32, #tpu.memory_space<vmem>>, vector<1x256xf32>
    %5 = vector.broadcast %4 : vector<1x256xf32> to vector<8x256xf32>
    %6 = arith.addf %3, %5 : vector<8x256xf32>
    %cst_7 = arith.constant 0.000000e+00 : f32
    %7 = vector.broadcast %cst_7 : f32 to vector<8x256xf32>
    %8 = arith.cmpf oge, %6, %7 : vector<8x256xf32>
    %cst_8 = arith.constant 0.00999999977 : f32
    %9 = vector.broadcast %cst_8 : f32 to vector<8x256xf32>
    %10 = arith.mulf %9, %6 : vector<8x256xf32>
    %11 = arith.select %8, %6, %10 : vector<8x256xi1>, vector<8x256xf32>
    %c0_9 = arith.constant 0 : index
    %c0_10 = arith.constant 0 : index
    %12 = vector.load %arg5[%c0_9, %c0_10] : memref<256x8xf32, #tpu.memory_space<vmem>>, vector<256x8xf32>
    %cst_11 = arith.constant dense<0.000000e+00> : vector<8x8xf32>
    %13 = tpu.matmul %11, %12, %cst_11 {dimension_numbers = #tpu.dot_dimension_numbers<[1], [0], [0], [1], [0, 0, 1, 1], [], []>} : vector<8x256xf32>, vector<256x8xf32>, vector<8x8xf32> -> vector<8x8xf32>
    %cst_12 = arith.constant dense<0xFF800000> : vector<8xf32>
    %14 = vector.multi_reduction <maximumf>, %13, %cst_12 [1] : vector<8x8xf32> to vector<8xf32>
    %15 = vector.shape_cast %14 : vector<8xf32> to vector<8x1xf32>
    %16 = vector.broadcast %15 : vector<8x1xf32> to vector<8x8xf32>
    %17 = arith.subf %13, %16 : vector<8x8xf32>
    %18 = math.exp %17 : vector<8x8xf32>
    %cst_13 = arith.constant dense<0.000000e+00> : vector<8xf32>
    %19 = vector.multi_reduction <add>, %18, %cst_13 [1] : vector<8x8xf32> to vector<8xf32>
    %20 = vector.shape_cast %19 : vector<8xf32> to vector<8x1xf32>
    %cst_14 = arith.constant 1.000000e+00 : f32
    %21 = vector.broadcast %cst_14 : f32 to vector<8x1xf32>
    %22 = arith.divf %21, %20 : vector<8x1xf32>
    %23 = vector.broadcast %22 : vector<8x1xf32> to vector<8x8xf32>
    %24 = arith.mulf %18, %23 : vector<8x8xf32>
    %c0_15 = arith.constant 0 : index
    %c0_16 = arith.constant 0 : index
    %25 = vector.load %arg6[%c0_15, %c0_16] : memref<8x256xf32, #tpu.memory_space<vmem>>, vector<8x256xf32>
    %cst_17 = arith.constant dense<0.000000e+00> : vector<8x256xf32>
    %26 = tpu.matmul %24, %25, %cst_17 {dimension_numbers = #tpu.dot_dimension_numbers<[1], [0], [0], [1], [0, 0, 1, 1], [], []>} : vector<8x8xf32>, vector<8x256xf32>, vector<8x256xf32> -> vector<8x256xf32>
    %27 = arith.mulf %1, %26 : vector<8x256xf32>
    %c0_18 = arith.constant 0 : index
    %c0_19 = arith.constant 0 : index
    %28 = vector.load %arg7[%c0_18, %c0_19] : memref<256x32xf32, #tpu.memory_space<vmem>>, vector<256x32xf32>
    %cst_20 = arith.constant dense<0.000000e+00> : vector<8x32xf32>
    %29 = tpu.matmul %27, %28, %cst_20 {dimension_numbers = #tpu.dot_dimension_numbers<[1], [0], [0], [1], [0, 0, 1, 1], [], []>} : vector<8x256xf32>, vector<256x32xf32>, vector<8x32xf32> -> vector<8x32xf32>
    %c0_21 = arith.constant 0 : index
    %c0_22 = arith.constant 0 : index
    %30 = vector.load %arg9[%c0_21, %c0_22] : memref<32x256xf32, #tpu.memory_space<vmem>>, vector<32x256xf32>
    %cst_23 = arith.constant dense<0.000000e+00> : vector<8x256xf32>
    %31 = tpu.matmul %29, %30, %cst_23 {dimension_numbers = #tpu.dot_dimension_numbers<[1], [0], [0], [1], [0, 0, 1, 1], [], []>} : vector<8x32xf32>, vector<32x256xf32>, vector<8x256xf32> -> vector<8x256xf32>
    %c0_24 = arith.constant 0 : index
    %c0_25 = arith.constant 0 : index
    %32 = vector.load %arg10[%c0_24, %c0_25] : memref<1x256xf32, #tpu.memory_space<vmem>>, vector<1x256xf32>
    %33 = vector.broadcast %32 : vector<1x256xf32> to vector<8x256xf32>
    %34 = arith.addf %31, %33 : vector<8x256xf32>
    %c0_26 = arith.constant 0 : index
    %c0_27 = arith.constant 0 : index
    %35 = vector.load %arg8[%c0_26, %c0_27] : memref<256x256xf32, #tpu.memory_space<vmem>>, vector<256x256xf32>
    %cst_28 = arith.constant dense<0.000000e+00> : vector<8x256xf32>
    %36 = tpu.matmul %1, %35, %cst_28 {dimension_numbers = #tpu.dot_dimension_numbers<[1], [0], [0], [1], [0, 0, 1, 1], [], []>} : vector<8x256xf32>, vector<256x256xf32>, vector<8x256xf32> -> vector<8x256xf32>
    %37 = arith.addf %36, %34 : vector<8x256xf32>
    %c0_29 = arith.constant 0 : index
    %c0_30 = arith.constant 0 : index
    %38 = vector.load %arg11[%c0_29, %c0_30] : memref<32x256xf32, #tpu.memory_space<vmem>>, vector<32x256xf32>
    %cst_31 = arith.constant dense<0.000000e+00> : vector<8x256xf32>
    %39 = tpu.matmul %0, %38, %cst_31 {dimension_numbers = #tpu.dot_dimension_numbers<[1], [0], [0], [1], [0, 0, 1, 1], [], []>} : vector<8x32xf32>, vector<32x256xf32>, vector<8x256xf32> -> vector<8x256xf32>
    %40 = arith.mulf %39, %1 : vector<8x256xf32>
    %41 = arith.addf %40, %37 : vector<8x256xf32>
    %cst_32 = arith.constant 0.000000e+00 : f32
    %42 = vector.broadcast %cst_32 : f32 to vector<8x256xf32>
    %43 = arith.cmpf oge, %41, %42 : vector<8x256xf32>
    %cst_33 = arith.constant 0.00999999977 : f32
    %44 = vector.broadcast %cst_33 : f32 to vector<8x256xf32>
    %45 = arith.mulf %44, %41 : vector<8x256xf32>
    %46 = arith.select %43, %41, %45 : vector<8x256xi1>, vector<8x256xf32>
    %c0_34 = arith.constant 0 : index
    %c0_35 = arith.constant 0 : index
    %47 = vector.load %arg12[%c0_34, %c0_35] : memref<8x256xf32, #tpu.memory_space<vmem>>, vector<8x256xf32>
    tpu.vector_store %arg12[%c0_34, %c0_35], %46 {strides = array<i32>} : memref<8x256xf32, #tpu.memory_space<vmem>>, vector<8x256xf32>,
    return
  }
  func.func @transform_0(%arg0: i32) -> (i32, i32) {
    %c0_i32 = arith.constant 0 : i32
    %c0_i32_0 = arith.constant 0 : i32
    return %arg0, %c0_i32 : i32, i32
  }
  func.func @transform_1(%arg0: i32) -> (i32, i32) {
    %c0_i32 = arith.constant 0 : i32
    %c0_i32_0 = arith.constant 0 : i32
    return %arg0, %c0_i32 : i32, i32
  }
  func.func @transform_2(%arg0: i32) -> (i32, i32) {
    %c0_i32 = arith.constant 0 : i32
    %c0_i32_0 = arith.constant 0 : i32
    %c0_i32_1 = arith.constant 0 : i32
    return %c0_i32, %c0_i32_0 : i32, i32
  }
  func.func @transform_3(%arg0: i32) -> (i32, i32) {
    %c0_i32 = arith.constant 0 : i32
    %c0_i32_0 = arith.constant 0 : i32
    %c0_i32_1 = arith.constant 0 : i32
    return %c0_i32, %c0_i32_0 : i32, i32
  }
  func.func @transform_4(%arg0: i32) -> (i32, i32) {
    %c0_i32 = arith.constant 0 : i32
    %c0_i32_0 = arith.constant 0 : i32
    %c0_i32_1 = arith.constant 0 : i32
    return %c0_i32, %c0_i32_0 : i32, i32
  }
  func.func @transform_5(%arg0: i32) -> (i32, i32) {
    %c0_i32 = arith.constant 0 : i32
    %c0_i32_0 = arith.constant 0 : i32
    %c0_i32_1 = arith.constant 0 : i32
    return %c0_i32, %c0_i32_0 : i32, i32
  }
  func.func @transform_6(%arg0: i32) -> (i32, i32) {
    %c0_i32 = arith.constant 0 : i32
    %c0_i32_0 = arith.constant 0 : i32
    %c0_i32_1 = arith.constant 0 : i32
    return %c0_i32, %c0_i32_0 : i32, i32
  }
  func.func @transform_7(%arg0: i32) -> (i32, i32) {
    %c0_i32 = arith.constant 0 : i32
    %c0_i32_0 = arith.constant 0 : i32
    %c0_i32_1 = arith.constant 0 : i32
    return %c0_i32, %c0_i32_0 : i32, i32
  }
  func.func @transform_8(%arg0: i32) -> (i32, i32) {
    %c0_i32 = arith.constant 0 : i32
    %c0_i32_0 = arith.constant 0 : i32
    %c0_i32_1 = arith.constant 0 : i32
    return %c0_i32, %c0_i32_0 : i32, i32
  }
  func.func @transform_9(%arg0: i32) -> (i32, i32) {
    %c0_i32 = arith.constant 0 : i32
    %c0_i32_0 = arith.constant 0 : i32
    %c0_i32_1 = arith.constant 0 : i32
    return %c0_i32, %c0_i32_0 : i32, i32
  }
  func.func @transform_10(%arg0: i32) -> (i32, i32) {
    %c0_i32 = arith.constant 0 : i32
    %c0_i32_0 = arith.constant 0 : i32
    %c0_i32_1 = arith.constant 0 : i32
    return %c0_i32, %c0_i32_0 : i32, i32
  }
  func.func @transform_11(%arg0: i32) -> (i32, i32) {
    %c0_i32 = arith.constant 0 : i32
    %c0_i32_0 = arith.constant 0 : i32
    return %arg0, %c0_i32 : i32, i32
  }
}

</mosaic_0001>

<bundles_post_ra>
// kernel: tpu_custom_call.1
= control target key start
LH: loop header
LB: loop body
LE: loop exit
PB: predicated region body
PF: predicated region fallthrough
CT: control target
= control target key end

     0   :  { %16 = vsyncpa [#allocation3], 0  ;;  %s1865_s0 = inlined_call_operand.vmem [shape: f32[8,32], index: 0, kind: input, shape index: {}]   ;;  %s1866_s1 = inlined_call_operand.vmem [shape: f32[8,256], index: 1, kind: input, shape index: {}]   ;;  %s1867_s2 = inlined_call_operand.vmem [shape: f32[256,256], index: 2, kind: input, shape index: {}]   ;;  %s1868_s3 = inlined_call_operand.vmem [shape: f32[1,256], index: 3, kind: input, shape index: {}]   ;;  %s1869_s4 = inlined_call_operand.vmem [shape: f32[256,8], index: 4, kind: input, shape index: {}]   ;;  %s1870_s5 = inlined_call_operand.hbm [shape: f32[8,256], index: 5, kind: input, shape index: {}]   ;;  %s1871_s6 = inlined_call_operand.vmem [shape: f32[256,32], index: 6, kind: input, shape index: {}]   ;;  %s1872_s7 = inlined_call_operand.hbm [shape: f32[256,256], index: 7, kind: input, shape index: {}]   ;;  %s1873_s8 = inlined_call_operand.hbm [shape: f32[32,256], index: 8, kind: input, shape index: {}]   ;;  %s1874_s9 = inlined_call_operand.vmem [shape: f32[1,256], index: 9, kind: input, shape index: {}]   ;;  %s1875_s10 = inlined_call_operand.hbm [shape: f32[32,256], index: 10, kind: input, shape index: {}]   ;;  %s1876_s11 = inlined_call_operand.hbm [shape: f32[8,256], index: 11, kind: output, shape index: {}]  }
   0x1   :  { %17 = vsyncpa [#allocation6], 0 }
   0x2   :  { %18 = vsyncpa [#allocation9], 0 }
   0x3   :  { %19 = vsyncpa [#allocation4], 0  ;;  %s1299_s17 = smov [#allocation5]   ;;  %s1181_s21 = scalar_lea.hbm %s1872_s7, 8192 }
   0x4   :  { %s47_s18 = sshll.u32 %s1299_s17, 4  ;;  %p1182_p0 = scmp.ne.s32.totalorder %s1872_s7, %s1181_s21  ;;  %s48_s18 = int_to_ptr.vmem [resolvable:$true] %s47_s18 }
   0x5   :  { %p1185_p1 = scmp.lt.u32.totalorder %s1181_s21, %s1872_s7 }
   0x7   :  { %p1187_p2 = pnand %p1185_p1, %p1182_p0 }
   0x9   :  { %1190 = shalt.err (!%p1187_p2)
}
   0xa   :  { %s1191_s26 = scalar_lea.vmem %s48_s18, 8192  ;;  %p1196_p4 = scmp.lt.s32.totalorder %s48_s18, %s48_s18 }
   0xb   :  { %p1192_p3 = scmp.ne.s32.totalorder %s48_s18, %s1191_s26  ;;  %p1197_p5 = scmp.lt.s32.totalorder %s1191_s26, %s1191_s26 }
   0xd   :  { %p1198_p6 = por %p1197_p5, %p1196_p4 }
   0xf   :  { %p1199_p7 = pnand %p1198_p6, %p1192_p3 }
  0x11   :  { %1202 = shalt.err (!%p1199_p7)
}
  0x12   :  { %s1300_s27 = smov 256   ;;  %s1301_s28 = smov 16  }
  0x13   :  { %53 = dma.hbm_to_vmem [thread:$0]  %s1872_s7, 8192, %s48_s18, [#allocation6], %s1300_s27, %s1300_s27, %s1301_s28  }
  0x14   :  { %s1302_s12 = smov [#allocation2]   ;;  %s1303_s14 = smov [#allocation7]  }
  0x15   :  { %s36_s13 = sshll.u32 %s1302_s12, 4  ;;  %s59_s15 = sshll.u32 %s1303_s14, 4  ;;  %s37_s13 = int_to_ptr.vmem [resolvable:$true] %s36_s13  ;;  %s60_s15 = int_to_ptr.vmem [resolvable:$true] %s59_s15 }
  0x16   :  { %s1203_s19 = scalar_lea.hbm %s1870_s5, 256 }
  0x17   :  { %p1204_p8 = scmp.ne.s32.totalorder %s1870_s5, %s1203_s19  ;;  %p1207_p9 = scmp.lt.u32.totalorder %s1203_s19, %s1870_s5 }
  0x19   :  { %p1209_p10 = pnand %p1207_p9, %p1204_p8 }
  0x1b   :  { %1212 = shalt.err (!%p1209_p10)
}
  0x1c   :  { %s1213_s7 = scalar_lea.vmem %s37_s13, 256  ;;  %p1218_p12 = scmp.lt.s32.totalorder %s37_s13, %s37_s13 }
  0x1d   :  { %p1214_p11 = scmp.ne.s32.totalorder %s37_s13, %s1213_s7  ;;  %p1219_p13 = scmp.lt.s32.totalorder %s1213_s7, %s1213_s7 }
  0x1f   :  { %p1220_p0 = por %p1219_p13, %p1218_p12 }
  0x21   :  { %p1221_p1 = pnand %p1220_p0, %p1214_p11 }
  0x23   :  { %1224 = shalt.err (!%p1221_p1)
}
  0x24   :  { %39 = dma.hbm_to_vmem [thread:$0]  %s1870_s5, 256, %s37_s13, [#allocation3]  }
  0x25   :  { %s1225_s29 = scalar_lea.hbm %s1873_s8, 1024 }
  0x26   :  { %p1226_p2 = scmp.ne.s32.totalorder %s1873_s8, %s1225_s29  ;;  %p1229_p3 = scmp.lt.u32.totalorder %s1225_s29, %s1873_s8 }
  0x28   :  { %p1231_p4 = pnand %p1229_p3, %p1226_p2 }
  0x2a   :  { %1234 = shalt.err (!%p1231_p4)
}
  0x2b   :  { %s1235_s17 = scalar_lea.vmem %s60_s15, 1024  ;;  %p1240_p6 = scmp.lt.s32.totalorder %s60_s15, %s60_s15 }
  0x2c   :  { %p1236_p5 = scmp.ne.s32.totalorder %s60_s15, %s1235_s17  ;;  %p1241_p7 = scmp.lt.s32.totalorder %s1235_s17, %s1235_s17 }
  0x2e   :  { %p1242_p8 = por %p1241_p7, %p1240_p6 }
  0x30   :  { %p1243_p9 = pnand %p1242_p8, %p1236_p5 }
  0x32   :  { %1246 = shalt.err (!%p1243_p9)
}
  0x33   :  { %65 = dma.hbm_to_vmem [thread:$0]  %s1873_s8, 1024, %s60_s15, [#allocation6], %s1300_s27, %s1300_s27, %s1301_s28  }
  0x34   :  { %s1304_s19 = smov [#allocation8]   ;;  %s1247_s23 = scalar_lea.hbm %s1875_s10, 1024 }
  0x35   :  { %s73_s20 = sshll.u32 %s1304_s19, 4  ;;  %p1248_p10 = scmp.ne.s32.totalorder %s1875_s10, %s1247_s23  ;;  %s74_s20 = int_to_ptr.vmem [resolvable:$true] %s73_s20 }
  0x36   :  { %p1251_p11 = scmp.lt.u32.totalorder %s1247_s23, %s1875_s10 }
  0x38   :  { %p1253_p12 = pnand %p1251_p11, %p1248_p10 }
  0x3a   :  { %1256 = shalt.err (!%p1253_p12)
}
  0x3b   :  { %s1257_s26 = scalar_lea.vmem %s74_s20, 1024  ;;  %p1262_p0 = scmp.lt.s32.totalorder %s74_s20, %s74_s20 }
  0x3c   :  { %p1258_p13 = scmp.ne.s32.totalorder %s74_s20, %s1257_s26  ;;  %p1263_p1 = scmp.lt.s32.totalorder %s1257_s26, %s1257_s26 }
  0x3e   :  { %p1264_p2 = por %p1263_p1, %p1262_p0 }
  0x40   :  { %p1265_p3 = pnand %p1264_p2, %p1258_p13 }
  0x42   :  { %1268 = shalt.err (!%p1265_p3)
}
  0x43   :  { %79 = dma.hbm_to_vmem [thread:$0]  %s1875_s10, 1024, %s74_s20, [#allocation9], %s1300_s27, %s1300_s27, %s1301_s28  }
  0x44   :  { %1291 = dma.done.wait [#allocation3], 256  }
  0x45   :  { %1292 = vsyncadd [#allocation3], 4294967040 }
  0x46   :  { %1293 = dma.done.wait [#allocation6], 9216  }
  0x47   :  { %1294 = vsyncadd [#allocation6], 4294958080 }
  0x48   :  { %1295 = dma.done.wait [#allocation9], 1024  }
  0x49   :  { %1296 = vsyncadd [#allocation9], 4294966272  ;;  %v96_v0 = vld [vmem:[%s1867_s2 + $0x8] sm:$0xff]  ;;  %v98_v1 = vld [vmem:[%s1867_s2 + $0x18] sm:$0xff]  ;;  %vm350_vm2 = vcmask 64512   ;;  %vm563_vm3 = vcmask 261120  }
  0x4a   :  { %v95_v2 = vld [vmem:[%s1867_s2] sm:$0xff]  ;;  %v957_v3 = vpack.c.bf16 %v98_v1, %v96_v0  ;;  %v97_v4 = vld [vmem:[%s1867_s2 + $0x10] sm:$0xff]  ;;  %v100_v5 = vld [vmem:[%s1867_s2 + $0x28] sm:$0xff] }
  0x4b   :  { %v102_v6 = vld [vmem:[%s1867_s2 + $0x38] sm:$0xff]  ;;  %v959_v7 = vpack.c.bf16 %v97_v4, %v95_v2  ;;  %v99_v9 = vld [vmem:[%s1867_s2 + $0x20] sm:$0xff]  ;;  %v101_v10 = vld [vmem:[%s1867_s2 + $0x30] sm:$0xff] }
  0x4c   :  { %v961_v8 = vpack.c.bf16 %v102_v6, %v100_v5  ;;  %v104_v11 = vld [vmem:[%s1867_s2 + $0x48] sm:$0xff]  ;;  %958 = vmatprep.subr.bf16.mxu0 %v957_v3  ;;  %v106_v12 = vld [vmem:[%s1867_s2 + $0x58] sm:$0xff]  ;;  %v963_v13 = vpack.c.bf16 %v101_v10, %v99_v9  ;;  %v103_v15 = vld [vmem:[%s1867_s2 + $0x40] sm:$0xff] }
  0x4d   :  { %960 = vmatpush1.bf16.msra.mxu0 %v959_v7  ;;  %v965_v14 = vpack.c.bf16 %v106_v12, %v104_v11  ;;  %v105_v16 = vld [vmem:[%s1867_s2 + $0x50] sm:$0xff]  ;;  %v108_v17 = vld [vmem:[%s1867_s2 + $0x68] sm:$0xff]  ;;  %v110_v18 = vld [vmem:[%s1867_s2 + $0x78] sm:$0xff] }
  0x4e   :  { %962 = vmatprep.subr.bf16.mxu0 %v961_v8  ;;  %v967_v19 = vpack.c.bf16 %v105_v16, %v103_v15  ;;  %v969_v20 = vpack.c.bf16 %v110_v18, %v108_v17  ;;  %v107_v21 = vld [vmem:[%s1867_s2 + $0x60] sm:$0xff]  ;;  %v109_v22 = vld [vmem:[%s1867_s2 + $0x70] sm:$0xff]  ;;  %v112_v23 = vld [vmem:[%s1867_s2 + $0x88] sm:$0xff] }
  0x4f   :  { %v114_v24 = vld [vmem:[%s1867_s2 + $0x98] sm:$0xff]  ;;  %v971_v25 = vpack.c.bf16 %v109_v22, %v107_v21  ;;  %v111_v27 = vld [vmem:[%s1867_s2 + $0x80] sm:$0xff]  ;;  %v113_v28 = vld [vmem:[%s1867_s2 + $0x90] sm:$0xff] }
  0x50   :  { %v973_v26 = vpack.c.bf16 %v114_v24, %v112_v23  ;;  %v116_v29 = vld [vmem:[%s1867_s2 + $0xa8] sm:$0xff]  ;;  %v118_v30 = vld [vmem:[%s1867_s2 + $0xb8] sm:$0xff]  ;;  %v975_v31 = vpack.c.bf16 %v113_v28, %v111_v27  ;;  %v115_v33 = vld [vmem:[%s1867_s2 + $0xa0] sm:$0xff] }
  0x51   :  { %964 = vmatpush1.bf16.msra.mxu0 %v963_v13  ;;  %v977_v32 = vpack.c.bf16 %v118_v30, %v116_v29  ;;  %v117_v34 = vld [vmem:[%s1867_s2 + $0xb0] sm:$0xff]  ;;  %v120_v35 = vld [vmem:[%s1867_s2 + $0xc8] sm:$0xff]  ;;  %v122_v36 = vld [vmem:[%s1867_s2 + $0xd8] sm:$0xff] }
  0x52   :  { %966 = vmatprep.subr.bf16.mxu0 %v965_v14  ;;  %v979_v37 = vpack.c.bf16 %v117_v34, %v115_v33  ;;  %v119_v38 = vld [vmem:[%s1867_s2 + $0xc0] sm:$0xff]  ;;  %v121_v39 = vld [vmem:[%s1867_s2 + $0xd0] sm:$0xff]  ;;  %v981_v40 = vpack.c.bf16 %v122_v36, %v120_v35  ;;  %v124_v41 = vld [vmem:[%s1867_s2 + $0xe8] sm:$0xff] }
  0x53   :  { %v126_v42 = vld [vmem:[%s1867_s2 + $0xf8] sm:$0xff]  ;;  %v1517_v43 = vld [vmem:[%s1866_s1 + $0x8] sm:$0xff]  ;;  %v264_v44 = vld [vmem:[%s1869_s4 + $0x80] sm:$0xff]  ;;  %v983_v51 = vpack.c.bf16 %v121_v39, %v119_v38 }
  0x54   :  { %235 = vmatprep.mubr.f32.mxu0 %v1517_v43  ;;  %v265_v45 = vld [vmem:[%s1869_s4 + $0x88] sm:$0xff]  ;;  %v248_v46 = vld [vmem:[%s1869_s4] sm:$0xff]  ;;  %v266_v49 = vld [vmem:[%s1869_s4 + $0x90] sm:$0xff]  ;;  %v985_v57 = vpack.c.bf16 %v126_v42, %v124_v41 }
  0x55   :  { %968 = vmatpush1.bf16.msra.mxu0 %v967_v19  ;;  %v1021_v47 = vpack.c.bf16 %v265_v45, %v264_v44  ;;  %v249_v48 = vld [vmem:[%s1869_s4 + $0x8] sm:$0xff]  ;;  %v267_v50 = vld [vmem:[%s1869_s4 + $0x98] sm:$0xff]  ;;  %v250_v54 = vld [vmem:[%s1869_s4 + $0x10] sm:$0xff] }
  0x56   :  { %970 = vmatprep.subr.bf16.mxu0 %v969_v20  ;;  %v1023_v52 = vpack.c.bf16 %v249_v48, %v248_v46  ;;  %v1025_v53 = vpack.c.bf16 %v267_v50, %v266_v49  ;;  %v251_v55 = vld [vmem:[%s1869_s4 + $0x18] sm:$0xff]  ;;  %v268_v56 = vld [vmem:[%s1869_s4 + $0xa0] sm:$0xff]  ;;  %v125_v59 = vld [vmem:[%s1867_s2 + $0xf0] sm:$0xff] }
  0x57   :  { %v123_v58 = vld [vmem:[%s1867_s2 + $0xe0] sm:$0xff]  ;;  %1022 = vmatprep.subr.bf16.mxu1 %v1021_v47  ;;  %v269_v60 = vld [vmem:[%s1869_s4 + $0xa8] sm:$0xff]  ;;  %v130_v62 = vld [vmem:[%s1867_s2 + $0x118] sm:$0xff]  ;;  %v1027_v63 = vpack.c.bf16 %v251_v55, %v250_v54 }
  0x58   :  { %v128_v61 = vld [vmem:[%s1867_s2 + $0x108] sm:$0xff]  ;;  %1024 = vmatpush3.bf16.msra.mxu1 %v1023_v52  ;;  %v1029_v0 = vpack.c.bf16 %v269_v60, %v268_v56  ;;  %v252_v1 = vld [vmem:[%s1869_s4 + $0x20] sm:$0xff]  ;;  %v987_v3 = vpack.c.bf16 %v125_v59, %v123_v58  ;;  %v270_v4 = vld [vmem:[%s1869_s4 + $0xb0] sm:$0xff] }
  0x59   :  { %972 = vmatpush1.bf16.msra.mxu0 %v971_v25  ;;  %1026 = vmatprep.subr.bf16.mxu1 %v1025_v53  ;;  %v253_v2 = vld [vmem:[%s1869_s4 + $0x28] sm:$0xff]  ;;  %v271_v5 = vld [vmem:[%s1869_s4 + $0xb8] sm:$0xff]  ;;  %v989_v6 = vpack.c.bf16 %v130_v62, %v128_v61  ;;  %v127_v7 = vld [vmem:[%s1867_s2 + $0x100] sm:$0xff] }
  0x5a   :  { %974 = vmatprep.subr.bf16.mxu0 %v973_v26  ;;  %v129_v8 = vld [vmem:[%s1867_s2 + $0x110] sm:$0xff]  ;;  %v132_v9 = vld [vmem:[%s1867_s2 + $0x128] sm:$0xff]  ;;  %v134_v10 = vld [vmem:[%s1867_s2 + $0x138] sm:$0xff]  ;;  %v1031_v11 = vpack.c.bf16 %v253_v2, %v252_v1  ;;  %v1033_v12 = vpack.c.bf16 %v271_v5, %v270_v4 }
  0x5b   :  { %v254_v13 = vld [vmem:[%s1869_s4 + $0x30] sm:$0xff]  ;;  %v255_v14 = vld [vmem:[%s1869_s4 + $0x38] sm:$0xff]  ;;  %v991_v15 = vpack.c.bf16 %v129_v8, %v127_v7  ;;  %v272_v16 = vld [vmem:[%s1869_s4 + $0xc0] sm:$0xff]  ;;  %v993_v18 = vpack.c.bf16 %v134_v10, %v132_v9 }
  0x5c   :  { %1028 = vmatpush3.bf16.msra.mxu1 %v1027_v63  ;;  %v273_v17 = vld [vmem:[%s1869_s4 + $0xc8] sm:$0xff]  ;;  %v131_v19 = vld [vmem:[%s1867_s2 + $0x120] sm:$0xff]  ;;  %v133_v20 = vld [vmem:[%s1867_s2 + $0x130] sm:$0xff]  ;;  %v1035_v23 = vpack.c.bf16 %v255_v14, %v254_v13 }
  0x5d   :  { %976 = vmatpush1.bf16.msra.mxu0 %v975_v31  ;;  %1030 = vmatprep.subr.bf16.mxu1 %v1029_v0  ;;  %v136_v21 = vld [vmem:[%s1867_s2 + $0x148] sm:$0xff]  ;;  %v138_v22 = vld [vmem:[%s1867_s2 + $0x158] sm:$0xff]  ;;  %v1037_v24 = vpack.c.bf16 %v273_v17, %v272_v16  ;;  %v256_v25 = vld [vmem:[%s1869_s4 + $0x40] sm:$0xff]  ;;  %v995_v27 = vpack.c.bf16 %v133_v20, %v131_v19  ;;  %v161_v19 = vlaneseq }
  0x5e   :  { %978 = vmatprep.subr.bf16.mxu0 %v977_v32  ;;  %v257_v26 = vld [vmem:[%s1869_s4 + $0x48] sm:$0xff]  ;;  %v274_v28 = vld [vmem:[%s1869_s4 + $0xd0] sm:$0xff]  ;;  %v275_v29 = vld [vmem:[%s1869_s4 + $0xd8] sm:$0xff]  ;;  %v997_v30 = vpack.c.bf16 %v138_v22, %v136_v21 }
  0x5f   :  { %v135_v31 = vld [vmem:[%s1867_s2 + $0x140] sm:$0xff]  ;;  %v137_v32 = vld [vmem:[%s1867_s2 + $0x150] sm:$0xff]  ;;  %v140_v33 = vld [vmem:[%s1867_s2 + $0x168] sm:$0xff]  ;;  %v1039_v35 = vpack.c.bf16 %v257_v26, %v256_v25  ;;  %v1041_v36 = vpack.c.bf16 %v275_v29, %v274_v28  ;;  %v1725_v20 = vshrl.u32 %v161_v19, 7 }
  0x60   :  { %1032 = vmatpush3.bf16.msra.mxu1 %v1031_v11  ;;  %v142_v34 = vld [vmem:[%s1867_s2 + $0x178] sm:$0xff]  ;;  %v999_v39 = vpack.c.bf16 %v137_v32, %v135_v31  ;;  %v139_v41 = vld [vmem:[%s1867_s2 + $0x160] sm:$0xff]  ;;  %v141_v42 = vld [vmem:[%s1867_s2 + $0x170] sm:$0xff] }
  0x61   :  { %980 = vmatpush1.bf16.msra.mxu0 %v979_v37  ;;  %1034 = vmatprep.subr.bf16.mxu1 %v1033_v12  ;;  %v258_v37 = vld [vmem:[%s1869_s4 + $0x50] sm:$0xff]  ;;  %v259_v38 = vld [vmem:[%s1869_s4 + $0x58] sm:$0xff]  ;;  %v144_v44 = vld [vmem:[%s1867_s2 + $0x188] sm:$0xff]  ;;  %v1003_v47 = vpack.c.bf16 %v141_v42, %v139_v41  ;;  %v163_v21 = vsub.s32 0, %v1725_v20 }
  0x62   :  { %982 = vmatprep.subr.bf16.mxu0 %v981_v40  ;;  %v1001_v40 = vpack.c.bf16 %v142_v34, %v140_v33  ;;  %v146_v45 = vld [vmem:[%s1867_s2 + $0x198] sm:$0xff]  ;;  %v1043_v46 = vpack.c.bf16 %v259_v38, %v258_v37  ;;  %v143_v49 = vld [vmem:[%s1867_s2 + $0x180] sm:$0xff]  ;;  %v145_v50 = vld [vmem:[%s1867_s2 + $0x190] sm:$0xff] }
  0x63   :  { %v1005_v48 = vpack.c.bf16 %v146_v45, %v144_v44  ;;  %v150_v52 = vld [vmem:[%s1867_s2 + $0x1b8] sm:$0xff]  ;;  %v1007_v53 = vpack.c.bf16 %v145_v50, %v143_v49  ;;  %v147_v55 = vld [vmem:[%s1867_s2 + $0x1a0] sm:$0xff]  ;;  %v149_v56 = vld [vmem:[%s1867_s2 + $0x1b0] sm:$0xff] }
  0x64   :  { %1036 = vmatpush3.bf16.msra.mxu1 %v1035_v23  ;;  %v154_v58 = vld [vmem:[%s1867_s2 + $0x1d8] sm:$0xff]  ;;  %v1011_v59 = vpack.c.bf16 %v149_v56, %v147_v55  ;;  %v151_v61 = vld [vmem:[%s1867_s2 + $0x1c0] sm:$0xff]  ;;  %v153_v62 = vld [vmem:[%s1867_s2 + $0x1d0] sm:$0xff]  ;;  %v167_v23 = vsub.s32 1, %v1725_v20 }
  0x65   :  { %984 = vmatpush1.bf16.msra.mxu0 %v983_v51  ;;  %1038 = vmatprep.subr.bf16.mxu1 %v1037_v24  ;;  %v148_v51 = vld [vmem:[%s1867_s2 + $0x1a8] sm:$0xff]  ;;  %v158_v0 = vld [vmem:[%s1867_s2 + $0x1f8] sm:$0xff]  ;;  %v1015_v1 = vpack.c.bf16 %v153_v62, %v151_v61  ;;  %v157_v4 = vld [vmem:[%s1867_s2 + $0x1f0] sm:$0xff] }
  0x66   :  { %986 = vmatprep.subr.bf16.mxu0 %v985_v57  ;;  %v1009_v54 = vpack.c.bf16 %v150_v52, %v148_v51  ;;  %v152_v57 = vld [vmem:[%s1867_s2 + $0x1c8] sm:$0xff]  ;;  %v276_v7 = vld [vmem:[%s1869_s4 + $0xe0] sm:$0xff]  ;;  %v278_v13 = vld [vmem:[%s1869_s4 + $0xf0] sm:$0xff] }
  0x67   :  { %v1013_v60 = vpack.c.bf16 %v154_v58, %v152_v57  ;;  %v156_v63 = vld [vmem:[%s1867_s2 + $0x1e8] sm:$0xff]  ;;  %v260_v10 = vld [vmem:[%s1869_s4 + $0x60] sm:$0xff]  ;;  %v279_v14 = vld [vmem:[%s1869_s4 + $0xf8] sm:$0xff] }
  0x68   :  { %1040 = vmatpush3.bf16.msra.mxu1 %v1039_v35  ;;  %v1017_v2 = vpack.c.bf16 %v158_v0, %v156_v63  ;;  %v277_v8 = vld [vmem:[%s1869_s4 + $0xe8] sm:$0xff]  ;;  %v262_v16 = vld [vmem:[%s1869_s4 + $0x70] sm:$0xff]  ;;  %v263_v17 = vld [vmem:[%s1869_s4 + $0x78] sm:$0xff] }
  0x69   :  { %988 = vmatpush1.bf16.msra.mxu0 %v987_v3  ;;  %1042 = vmatprep.subr.bf16.mxu1 %v1041_v36  ;;  %v155_v3 = vld [vmem:[%s1867_s2 + $0x1e0] sm:$0xff]  ;;  %v1045_v9 = vpack.c.bf16 %v277_v8, %v276_v7  ;;  %v261_v11 = vld [vmem:[%s1869_s4 + $0x68] sm:$0xff]  ;;  %v447_v8 = vld [vmem:[%s1871_s6 + $0x30] sm:$0xff] }
  0x6a   :  { %990 = vmatprep.subr.bf16.mxu0 %v989_v6  ;;  %v1019_v5 = vpack.c.bf16 %v157_v4, %v155_v3  ;;  %v1697_v6 = vld [vmem:[%s1866_s1] sm:$0xff]  ;;  %v1047_v12 = vpack.c.bf16 %v261_v11, %v260_v10  ;;  %v364_v44 = vld [vmem:[#allocation2 + $0x8] sm:$0xff]  ;;  %v463_v3 = vld [vmem:[%s1871_s6 + $0xb0] sm:$0xff] }
  0x6b   :  { %v159_v22 = vld [vmem:[%s1868_s3] sm:$0x3]  ;;  %v442_v52 = vld [vmem:[%s1871_s6 + $0x8] sm:$0xff]  ;;  %v464_v4 = vld [vmem:[%s1871_s6 + $0xb8] sm:$0xff] }
  0x6c   :  { %1044 = vmatpush3.bf16.msra.mxu1 %v1043_v46  ;;  %v164_v24 = vrot.slane %v159_v22, %v163_v21  ;;  %v168_v25 = vrot.slane %v159_v22, %v167_v23  ;;  %v363_v45 = vld [vmem:[#allocation2] sm:$0xff]  ;;  %v1305_v46 = vmov 0.0   ;;  %v462_v62 = vld [vmem:[%s1871_s6 + $0xa8] sm:$0xff]  ;;  %v1065_v7 = vpack.c.bf16 %v464_v4, %v463_v3  ;;  %v451_v22 = vld [vmem:[%s1871_s6 + $0x50] sm:$0xff] }
  0x6d   :  { %992 = vmatpush1.bf16.msra.mxu0 %v991_v15  ;;  %1046 = vmatprep.subr.bf16.mxu1 %v1045_v9  ;;  %v1049_v15 = vpack.c.bf16 %v279_v14, %v278_v13  ;;  %v441_v51 = vld [vmem:[%s1871_s6] sm:$0xff]  ;;  %v448_v9 = vld [vmem:[%s1871_s6 + $0x38] sm:$0xff]  ;;  %v466_v11 = vld [vmem:[%s1871_s6 + $0xc8] sm:$0xff] }
  0x6e   :  { %994 = vmatprep.subr.bf16.mxu0 %v993_v18  ;;  %v1051_v18 = vpack.c.bf16 %v263_v17, %v262_v16  ;;  %v1055_v56 = vpack.c.bf16 %v442_v52, %v441_v51  ;;  %v461_v61 = vld [vmem:[%s1871_s6 + $0xa0] sm:$0xff]  ;;  %v467_v16 = vld [vmem:[%s1871_s6 + $0xd0] sm:$0xff]  ;;  %v468_v17 = vld [vmem:[%s1871_s6 + $0xd8] sm:$0xff] }
  0x6f   :  { %v1061_v0 = vpack.c.bf16 %v462_v62, %v461_v61  ;;  %v465_v10 = vld [vmem:[%s1871_s6 + $0xc0] sm:$0xff]  ;;  %v1073_v19 = vpack.c.bf16 %v468_v17, %v467_v16  ;;  %v647_v51 = vld [vmem:[#allocation5 + $0x48] sm:$0xff]  ;;  %v649_v52 = vld [vmem:[#allocation5 + $0x58] sm:$0xff] }
  0x70   :  { %1048 = vmatpush3.bf16.msra.mxu1 %v1047_v12  ;;  %v1067_v12 = vpack.c.bf16 %v448_v9, %v447_v8  ;;  %v1069_v13 = vpack.c.bf16 %v466_v11, %v465_v10  ;;  %v449_v14 = vld [vmem:[%s1871_s6 + $0x40] sm:$0xff]  ;;  %v650_v61 = vld [vmem:[#allocation5 + $0x60] sm:$0xff] }
  0x71   :  { %996 = vmatpush1.bf16.msra.mxu0 %v995_v27  ;;  %1050 = vmatprep.subr.bf16.mxu1 %v1049_v15  ;;  %v450_v15 = vld [vmem:[%s1871_s6 + $0x48] sm:$0xff]  ;;  %v652_v62 = vld [vmem:[#allocation5 + $0x70] sm:$0xff]  ;;  %v654_v3 = vld [vmem:[#allocation5 + $0x80] sm:$0xff] }
  0x72   :  { %998 = vmatprep.subr.bf16.mxu0 %v997_v30  ;;  %v656_v4 = vld [vmem:[#allocation5 + $0x90] sm:$0xff]  ;;  %v658_v10 = vld [vmem:[#allocation5 + $0xa0] sm:$0xff] }
  0x73   :  { %v1111_v8 = vpack.c.bf16 %v656_v4, %v654_v3  ;;  %v660_v11 = vld [vmem:[#allocation5 + $0xb0] sm:$0xff]  ;;  %v695_v4 = vld [vmem:[#allocation5 + $0x1c8] sm:$0xff] }
  0x74   :  { %1052 = vmatpush3.bf16.msra.mxu1 %v1051_v18  ;;  %v1071_v18 = vpack.c.bf16 %v450_v15, %v449_v14  ;;  %v544_v14 = vld [vmem:[#allocation7 + $0x8] sm:$0xff]  ;;  %v546_v15 = vld [vmem:[#allocation7 + $0x18] sm:$0xff]  ;;  %v1115_v17 = vpack.c.bf16 %v660_v11, %v658_v10  ;;  %v692_v3 = vld [vmem:[#allocation5 + $0x1b0] sm:$0xff] }
  0x75   :  { %1000 = vmatpush1.bf16.msra.mxu0 %v999_v39  ;;  %368 = vmatprep.subr.mxu1 %v364_v44  ;;  %v643_v44 = vld [vmem:[#allocation5 + $0x28] sm:$0xff]  ;;  %v1085_v16 = vpack.c.bf16 %v546_v15, %v544_v14  ;;  %v696_v10 = vld [vmem:[#allocation5 + $0x1d0] sm:$0xff] }
  0x76   :  { %1002 = vmatprep.subr.bf16.mxu0 %v1001_v40  ;;  %v548_v15 = vld [vmem:[#allocation7 + $0x28] sm:$0xff] }
  0x79   :  { %1004 = vmatpush1.bf16.msra.mxu0 %v1003_v47  ;;  %v457_v47 = vld [vmem:[%s1871_s6 + $0x80] sm:$0xff] }
  0x7a   :  { %1006 = vmatprep.subr.bf16.mxu0 %v1005_v48  ;;  %v458_v48 = vld [vmem:[%s1871_s6 + $0x88] sm:$0xff] }
  0x7b   :  { %v1053_v49 = vpack.c.bf16 %v458_v48, %v457_v47 }
  0x7d   :  { %1008 = vmatpush1.bf16.msra.mxu0 %v1007_v53  ;;  %v459_v53 = vld [vmem:[%s1871_s6 + $0x90] sm:$0xff] }
  0x7e   :  { %1010 = vmatprep.subr.bf16.mxu0 %v1009_v54  ;;  %v460_v54 = vld [vmem:[%s1871_s6 + $0x98] sm:$0xff] }
  0x7f   :  { %v1057_v58 = vpack.c.bf16 %v460_v54, %v459_v53  ;;  %v1101_v54 = vpack.c.bf16 %v649_v52, %v647_v51  ;;  %v685_v51 = vld [vmem:[#allocation5 + $0x178] sm:$0xff] }
  0x81   :  { %1012 = vmatpush1.bf16.msra.mxu0 %v1011_v59  ;;  %v443_v59 = vld [vmem:[%s1871_s6 + $0x10] sm:$0xff] }
  0x82   :  { %1014 = vmatprep.subr.bf16.mxu0 %v1013_v60  ;;  %v444_v60 = vld [vmem:[%s1871_s6 + $0x18] sm:$0xff] }
  0x83   :  { %v1059_v63 = vpack.c.bf16 %v444_v60, %v443_v59 }
  0x85   :  { %1016 = vmatpush1.bf16.msra.mxu0 %v1015_v1  ;;  %v445_v1 = vld [vmem:[%s1871_s6 + $0x20] sm:$0xff] }
  0x86   :  { %1018 = vmatprep.subr.bf16.mxu0 %v1017_v2  ;;  %v446_v2 = vld [vmem:[%s1871_s6 + $0x28] sm:$0xff] }
  0x89   :  { %1020 = vmatpush1.bf16.msra.mxu0 %v1019_v5  ;;  %v1063_v5 = vpack.c.bf16 %v446_v2, %v445_v1  ;;  %v1107_v1 = vpack.c.bf16 %v652_v62, %v650_v61  ;;  %v688_v61 = vld [vmem:[#allocation5 + $0x190] sm:$0xff]  ;;  %v691_v62 = vld [vmem:[#allocation5 + $0x1a8] sm:$0xff] }
  0x8c   :  { %236 = vmatmul.mubr.f32.vlgmr.msra.gmra.mrb[0].mxu0 %v1697_v6 }
  0x8d   :  { %766 = vmatprep.mubr.f32.mxu0 %v1517_v43 }
 0x15f   :  { %v237_v26 = vpop.f32.mrb[0].mxu0 }
 0x160   :  { %v238_v27 = vadd.f32 %v237_v26, %v164_v24  ;;  %v239_v28 = vpop.f32.mrb[1].mxu0  ;;  %v452_v24 = vld [vmem:[%s1871_s6 + $0x58] sm:$0xff]  ;;  %v470_v26 = vld [vmem:[%s1871_s6 + $0xe8] sm:$0xff] }
 0x161   :  { %v240_v29 = vadd.f32 %v239_v28, %v168_v25  ;;  %v469_v25 = vld [vmem:[%s1871_s6 + $0xe0] sm:$0xff] }
 0x162   :  { %v244_v30 = vmul.f32 0.01, %v238_v27  ;;  %vm242_vm1 = vcmp.ge.f32.partialorder %v238_v27, 0.0  ;;  %v1077_v28 = vpack.c.bf16 %v470_v26, %v469_v25  ;;  %v669_v25 = vld [vmem:[#allocation5 + $0xf8] sm:$0xff] }
 0x163   :  { %vm243_vm0 = vcmp.ge.f32.partialorder %v240_v29, 0.0  ;;  %v245_v31 = vmul.f32 0.01, %v240_v29 }
 0x164   :  { %v246_v33 = vsel %vm242_vm1, %v238_v27, %v244_v30  ;;  %v1075_v27 = vpack.c.bf16 %v452_v24, %v451_v22  ;;  %v454_v30 = vld [vmem:[%s1871_s6 + $0x68] sm:$0xff]  ;;  %v664_v22 = vld [vmem:[#allocation5 + $0xd0] sm:$0xff]  ;;  %v667_v24 = vld [vmem:[#allocation5 + $0xe8] sm:$0xff] }
 0x165   :  { %v247_v32 = vsel %vm243_vm0, %v240_v29, %v245_v31  ;;  %v453_v29 = vld [vmem:[%s1871_s6 + $0x60] sm:$0xff] }
 0x166   :  { %344 = vmatprep.mubr.f32.mxu1 %v247_v32  ;;  %v1079_v31 = vpack.c.bf16 %v454_v30, %v453_v29  ;;  %v471_v32 = vld [vmem:[%s1871_s6 + $0xf0] sm:$0xff]  ;;  %v668_v29 = vld [vmem:[#allocation5 + $0xf0] sm:$0xff]  ;;  %v671_v30 = vld [vmem:[#allocation5 + $0x108] sm:$0xff] }
 0x167   :  { %345 = vmatmul.mubr.f32.vlgmr.msra.gmra.mrb[0].mxu1 %v246_v33  ;;  %v472_v33 = vld [vmem:[%s1871_s6 + $0xf8] sm:$0xff] }
 0x168   :  { %369 = vmatpush1.msra.mxu1 %v363_v45  ;;  %432 = vmatprep.mubr.f32.mxu1 %v1305_v46  ;;  %v645_v45 = vld [vmem:[#allocation5 + $0x38] sm:$0xff] }
 0x169   :  { %1054 = vmatprep.subr.bf16.mxu1 %v1053_v49  ;;  %v1097_v48 = vpack.c.bf16 %v645_v45, %v643_v44  ;;  %v642_v49 = vld [vmem:[#allocation5 + $0x20] sm:$0xff]  ;;  %v681_v44 = vld [vmem:[#allocation5 + $0x158] sm:$0xff] }
 0x23a   :  { %v919_v34 = vpop.f32.mrb[0].mxu1 }
 0x23b   :  { %v920_v35 = vpop.f32.mrb[1].mxu1 }
 0x23c   :  { %v921_v36 = vadd.f32 %v920_v35, %v919_v34  ;;  %v1081_v34 = vpack.c.bf16 %v472_v33, %v471_v32  ;;  %v455_v35 = vld [vmem:[%s1871_s6 + $0x70] sm:$0xff] }
 0x23e   :  { %v351_v37 = vsel %vm350_vm2, %v921_v36, -inf }
 0x23f   :  { %352 = vmax.xlane.f32.xlu0 %v351_v37 }
 0x2cc   :  { %v353_v38 = vpop.xlane.xlu0 %352 }
 0x2cd   :  { %v354_v39 = vsub.f32 %v921_v36, %v353_v38  ;;  %v456_v36 = vld [vmem:[%s1871_s6 + $0x78] sm:$0xff] }
 0x2ce   :  { %v1083_v37 = vpack.c.bf16 %v456_v36, %v455_v35  ;;  %v639_v38 = vld [vmem:[#allocation5 + $0x8] sm:$0xff]  ;;  %v672_v35 = vld [vmem:[#allocation5 + $0x110] sm:$0xff] }
 0x2cf   :  { %v355_v40 = vmul.f32 1.442695, %v354_v39  ;;  %v641_v39 = vld [vmem:[#allocation5 + $0x18] sm:$0xff]  ;;  %v675_v36 = vld [vmem:[#allocation5 + $0x128] sm:$0xff] }
 0x2d1   :  { %1177 = vpow2.f32 %v355_v40  ;;  %v638_v40 = vld [vmem:[#allocation5] sm:$0xff] }
 0x2db   :  { %v1178_v41 = vpop.eup %1177 }
 0x2dc   :  { %v357_v42 = vsel %vm350_vm2, %v1178_v41, 0.0 }
 0x2dd   :  { %358 = vadd.xlane.f32.xlu0 %v357_v42  ;;  %v640_v42 = vld [vmem:[#allocation5 + $0x10] sm:$0xff] }
 0x2de   :  { %v1095_v47 = vpack.c.bf16 %v640_v42, %v638_v40  ;;  %v674_v40 = vld [vmem:[#allocation5 + $0x120] sm:$0xff]  ;;  %v679_v42 = vld [vmem:[#allocation5 + $0x148] sm:$0xff] }
 0x36a   :  { %v359_v50 = vpop.xlane.xlu0 %358 }
 0x36b   :  { %1179 = vrcp.f32 %v359_v50  ;;  %v644_v50 = vld [vmem:[#allocation5 + $0x30] sm:$0xff] }
 0x36c   :  { %v1099_v53 = vpack.c.bf16 %v644_v50, %v642_v49  ;;  %v680_v49 = vld [vmem:[#allocation5 + $0x150] sm:$0xff]  ;;  %v683_v50 = vld [vmem:[#allocation5 + $0x168] sm:$0xff] }
 0x375   :  { %v1180_v55 = vpop.eup %1179 }
 0x376   :  { %v362_v57 = vmul.f32 %v1180_v55, %v1178_v41  ;;  %v1093_v41 = vpack.c.bf16 %v641_v39, %v639_v38  ;;  %v646_v55 = vld [vmem:[#allocation5 + $0x40] sm:$0xff] }
 0x378   :  { %884 = vmatmul.mubr.msk.f32.vlgmr.msra.gmra.mrb[2].mxu1 %vm350_vm2, %v362_v57  ;;  %1094 = vmatprep.subr.bf16.mxu0 %v1093_v41  ;;  %v651_v57 = vld [vmem:[#allocation5 + $0x68] sm:$0xff]  ;;  %v676_v41 = vld [vmem:[#allocation5 + $0x130] sm:$0xff] }
 0x379   :  { %1056 = vmatpush3.bf16.msra.mxu1 %v1055_v56  ;;  %1096 = vmatpush1.bf16.msra.mxu0 %v1095_v47  ;;  %v648_v56 = vld [vmem:[#allocation5 + $0x50] sm:$0xff]  ;;  %v1131_v45 = vpack.c.bf16 %v676_v41, %v674_v40  ;;  %v1133_v47 = vpack.c.bf16 %v681_v44, %v679_v42  ;;  %v780_v40 = vld [vmem:[#allocation8 + $0x38] sm:$0xff] }
 0x37a   :  { %1058 = vmatprep.subr.bf16.mxu1 %v1057_v58  ;;  %1098 = vmatprep.subr.bf16.mxu0 %v1097_v48  ;;  %v653_v58 = vld [vmem:[#allocation5 + $0x78] sm:$0xff]  ;;  %v1103_v59 = vpack.c.bf16 %v648_v56, %v646_v55  ;;  %v678_v48 = vld [vmem:[#allocation5 + $0x140] sm:$0xff]  ;;  %v684_v55 = vld [vmem:[#allocation5 + $0x170] sm:$0xff] }
 0x37b   :  { %v1105_v60 = vpack.c.bf16 %v653_v58, %v651_v57  ;;  %v1135_v52 = vpack.c.bf16 %v680_v49, %v678_v48  ;;  %v687_v56 = vld [vmem:[#allocation5 + $0x188] sm:$0xff]  ;;  %v689_v57 = vld [vmem:[#allocation5 + $0x198] sm:$0xff]  ;;  %v777_v48 = vld [vmem:[#allocation8 + $0x20] sm:$0xff] }
 0x37c   :  { %v779_v49 = vld [vmem:[#allocation8 + $0x30] sm:$0xff] }
 0x37d   :  { %1060 = vmatpush3.bf16.msra.mxu1 %v1059_v63  ;;  %1100 = vmatpush1.bf16.msra.mxu0 %v1099_v53  ;;  %v655_v63 = vld [vmem:[#allocation5 + $0x88] sm:$0xff]  ;;  %v1137_v53 = vpack.c.bf16 %v685_v51, %v683_v50  ;;  %v1163_v50 = vpack.c.bf16 %v779_v49, %v777_v48  ;;  %v92_v51 = vld [vmem:[%s1865_s0] sm:$0xff]  ;;  %s1306_s0 = smov [#allocation10]  }
 0x37e   :  { %1062 = vmatprep.subr.bf16.mxu1 %v1061_v0  ;;  %1102 = vmatprep.subr.bf16.mxu0 %v1101_v54  ;;  %v657_v0 = vld [vmem:[#allocation5 + $0x98] sm:$0xff]  ;;  %v682_v54 = vld [vmem:[#allocation5 + $0x160] sm:$0xff] }
 0x37f   :  { %v1109_v2 = vpack.c.bf16 %v657_v0, %v655_v63  ;;  %v1139_v58 = vpack.c.bf16 %v684_v55, %v682_v54  ;;  %v693_v63 = vld [vmem:[#allocation5 + $0x1b8] sm:$0xff]  ;;  %v551_v54 = vld [vmem:[%s1874_s9] sm:$0x3]  ;;  %s873_s9 = sshll.u32 %s1306_s0, 4  ;;  %s874_s9 = int_to_ptr.vmem [resolvable:$true] %s873_s9 }
 0x380   :  { %v556_v55 = vrot.slane %v551_v54, %v163_v21  ;;  %s1269_s2 = scalar_lea.vmem %s874_s9, 256  ;;  %p1274_p5 = scmp.lt.s32.totalorder %s874_s9, %s874_s9 }
 0x381   :  { %1064 = vmatpush3.bf16.msra.mxu1 %v1063_v5  ;;  %1104 = vmatpush1.bf16.msra.mxu0 %v1103_v59  ;;  %v659_v5 = vld [vmem:[#allocation5 + $0xa8] sm:$0xff]  ;;  %v1141_v59 = vpack.c.bf16 %v689_v57, %v687_v56  ;;  %v560_v56 = vrot.slane %v551_v54, %v167_v23  ;;  %p1270_p4 = scmp.ne.s32.totalorder %s874_s9, %s1269_s2  ;;  %p1275_p6 = scmp.lt.s32.totalorder %s1269_s2, %s1269_s2 }
 0x382   :  { %1066 = vmatprep.subr.bf16.mxu1 %v1065_v7  ;;  %1106 = vmatprep.subr.bf16.mxu0 %v1105_v60  ;;  %v661_v7 = vld [vmem:[#allocation5 + $0xb8] sm:$0xff]  ;;  %v686_v60 = vld [vmem:[#allocation5 + $0x180] sm:$0xff] }
 0x383   :  { %v1113_v9 = vpack.c.bf16 %v661_v7, %v659_v5  ;;  %v1143_v0 = vpack.c.bf16 %v688_v61, %v686_v60  ;;  %v697_v5 = vld [vmem:[#allocation5 + $0x1d8] sm:$0xff]  ;;  %p1276_p7 = por %p1275_p6, %p1274_p5 }
 0x385   :  { %1068 = vmatpush3.bf16.msra.mxu1 %v1067_v12  ;;  %1108 = vmatpush1.bf16.msra.mxu0 %v1107_v1  ;;  %v663_v12 = vld [vmem:[#allocation5 + $0xc8] sm:$0xff]  ;;  %v1145_v1 = vpack.c.bf16 %v693_v63, %v691_v62  ;;  %p1277_p8 = pnand %p1276_p7, %p1270_p4 }
 0x386   :  { %1070 = vmatprep.subr.bf16.mxu1 %v1069_v13  ;;  %1110 = vmatprep.subr.bf16.mxu0 %v1109_v2  ;;  %v665_v13 = vld [vmem:[#allocation5 + $0xd8] sm:$0xff]  ;;  %v690_v2 = vld [vmem:[#allocation5 + $0x1a0] sm:$0xff] }
 0x387   :  { %v1147_v7 = vpack.c.bf16 %v692_v3, %v690_v2 }
 0x389   :  { %1072 = vmatpush3.bf16.msra.mxu1 %v1071_v18  ;;  %1112 = vmatpush1.bf16.msra.mxu0 %v1111_v8  ;;  %v1117_v18 = vpack.c.bf16 %v665_v13, %v663_v12  ;;  %v1149_v8 = vpack.c.bf16 %v697_v5, %v695_v4  ;;  %v543_v12 = vld [vmem:[#allocation7] sm:$0xff]  ;;  %v545_v13 = vld [vmem:[#allocation7 + $0x10] sm:$0xff] }
 0x38a   :  { %1074 = vmatprep.subr.bf16.mxu1 %v1073_v19  ;;  %1114 = vmatprep.subr.bf16.mxu0 %v1113_v9  ;;  %v662_v19 = vld [vmem:[#allocation5 + $0xc0] sm:$0xff] }
 0x38b   :  { %v1119_v26 = vpack.c.bf16 %v664_v22, %v662_v19  ;;  %v694_v9 = vld [vmem:[#allocation5 + $0x1c0] sm:$0xff]  ;;  %v1087_v19 = vpack.c.bf16 %v545_v13, %v543_v12 }
 0x38c   :  { %v1151_v11 = vpack.c.bf16 %v696_v10, %v694_v9 }
 0x38d   :  { %1076 = vmatpush3.bf16.msra.mxu1 %v1075_v27  ;;  %1116 = vmatpush1.bf16.msra.mxu0 %v1115_v17  ;;  %v1121_v27 = vpack.c.bf16 %v669_v25, %v667_v24  ;;  %v547_v25 = vld [vmem:[#allocation7 + $0x20] sm:$0xff] }
 0x38e   :  { %1078 = vmatprep.subr.bf16.mxu1 %v1077_v28  ;;  %1118 = vmatprep.subr.bf16.mxu0 %v1117_v18  ;;  %v666_v28 = vld [vmem:[#allocation5 + $0xe0] sm:$0xff] }
 0x38f   :  { %v1123_v32 = vpack.c.bf16 %v668_v29, %v666_v28  ;;  %v699_v28 = vld [vmem:[#allocation5 + $0x1e8] sm:$0xff]  ;;  %v701_v29 = vld [vmem:[#allocation5 + $0x1f8] sm:$0xff] }
 0x391   :  { %1080 = vmatpush3.bf16.msra.mxu1 %v1079_v31  ;;  %v673_v31 = vld [vmem:[#allocation5 + $0x118] sm:$0xff]  ;;  %1120 = vmatpush1.bf16.msra.mxu0 %v1119_v26  ;;  %v549_v26 = vld [vmem:[#allocation7 + $0x30] sm:$0xff] }
 0x392   :  { %1082 = vmatprep.subr.bf16.mxu1 %v1081_v34  ;;  %1122 = vmatprep.subr.bf16.mxu0 %v1121_v27  ;;  %v1125_v33 = vpack.c.bf16 %v673_v31, %v671_v30  ;;  %v670_v34 = vld [vmem:[#allocation5 + $0x100] sm:$0xff]  ;;  %v1091_v27 = vpack.c.bf16 %v549_v26, %v547_v25  ;;  %v1153_v30 = vpack.c.bf16 %v701_v29, %v699_v28 }
 0x393   :  { %v1127_v38 = vpack.c.bf16 %v672_v35, %v670_v34  ;;  %v698_v31 = vld [vmem:[#allocation5 + $0x1e0] sm:$0xff]  ;;  %v776_v35 = vld [vmem:[#allocation8 + $0x18] sm:$0xff] }
 0x395   :  { %1084 = vmatpush3.bf16.msra.mxu1 %v1083_v37  ;;  %v677_v37 = vld [vmem:[#allocation5 + $0x138] sm:$0xff]  ;;  %1124 = vmatpush1.bf16.msra.mxu0 %v1123_v32  ;;  %v700_v32 = vld [vmem:[#allocation5 + $0x1f0] sm:$0xff] }
 0x396   :  { %1086 = vmatprep.subr.bf16.mxu1 %v1085_v16  ;;  %1126 = vmatprep.subr.bf16.mxu0 %v1125_v33  ;;  %v1129_v39 = vpack.c.bf16 %v677_v37, %v675_v36  ;;  %v550_v16 = vld [vmem:[#allocation7 + $0x38] sm:$0xff]  ;;  %v774_v33 = vld [vmem:[#allocation8 + $0x8] sm:$0xff]  ;;  %v1155_v34 = vpack.c.bf16 %v700_v32, %v698_v31  ;;  %v773_v37 = vld [vmem:[#allocation8] sm:$0xff] }
 0x397   :  { %v1089_v24 = vpack.c.bf16 %v550_v16, %v548_v15  ;;  %v1157_v36 = vpack.c.bf16 %v776_v35, %v774_v33 }
 0x399   :  { %1128 = vmatpush1.bf16.msra.mxu0 %v1127_v38  ;;  %v775_v38 = vld [vmem:[#allocation8 + $0x10] sm:$0xff] }
 0x39a   :  { %1130 = vmatprep.subr.bf16.mxu0 %v1129_v39  ;;  %v778_v39 = vld [vmem:[#allocation8 + $0x28] sm:$0xff]  ;;  %v1159_v44 = vpack.c.bf16 %v775_v38, %v773_v37 }
 0x39d   :  { %1132 = vmatpush1.bf16.msra.mxu0 %v1131_v45 }
 0x39e   :  { %1134 = vmatprep.subr.bf16.mxu0 %v1133_v47  ;;  %v1161_v47 = vpack.c.bf16 %v780_v40, %v778_v39 }
 0x3a1   :  { %1136 = vmatpush1.bf16.msra.mxu0 %v1135_v52 }
 0x3a2   :  { %1138 = vmatprep.subr.bf16.mxu0 %v1137_v53 }
 0x3a5   :  { %1140 = vmatpush1.bf16.msra.mxu0 %v1139_v58 }
 0x3a6   :  { %1142 = vmatprep.subr.bf16.mxu0 %v1141_v59 }
 0x3a9   :  { %1144 = vmatpush1.bf16.msra.mxu0 %v1143_v0 }
 0x3aa   :  { %1146 = vmatprep.subr.bf16.mxu0 %v1145_v1 }
 0x3ad   :  { %1148 = vmatpush1.bf16.msra.mxu0 %v1147_v7 }
 0x3ae   :  { %1150 = vmatprep.subr.bf16.mxu0 %v1149_v8 }
 0x3b1   :  { %1152 = vmatpush1.bf16.msra.mxu0 %v1151_v11 }
 0x3b2   :  { %1154 = vmatprep.subr.bf16.mxu0 %v1153_v30 }
 0x3b5   :  { %1156 = vmatpush1.bf16.msra.mxu0 %v1155_v34 }
 0x3b8   :  { %767 = vmatmul.mubr.f32.vlgmr.msra.gmra.mrb[2].mxu0 %v1697_v6 }
 0x44b   :  { %v434_v14 = vpop.f32.mrb[2].mxu1 }
 0x44c   :  { %v436_v17 = vpop.f32.mrb[3].mxu1  ;;  %v439_v22 = vmul.f32 %v434_v14, %v1697_v6 }
 0x44d   :  { %v440_v18 = vmul.f32 %v436_v17, %v1517_v43 }
 0x44f   :  { %537 = vmatprep.mubr.f32.mxu1 %v440_v18 }
 0x450   :  { %538 = vmatmul.mubr.f32.vlgmr.msra.gmra.mrb[4].mxu1 %v439_v22 }
 0x451   :  { %1088 = vmatpush1.bf16.msra.mxu1 %v1087_v19  ;;  %631 = vmatprep.mubr.f32.mxu1 %v1305_v46 }
 0x452   :  { %1090 = vmatprep.subr.bf16.mxu1 %v1089_v24 }
 0x455   :  { %1092 = vmatpush1.bf16.msra.mxu1 %v1091_v27 }
 0x456   :  { %1158 = vmatprep.subr.bf16.mxu1 %v1157_v36 }
 0x48b   :  { %v768_v52 = vpop.f32.mrb[2].mxu0 }
 0x48c   :  { %v770_v53 = vpop.f32.mrb[3].mxu0 }
 0x523   :  { %v954_v41 = vpop.f32.mrb[4].mxu1 }
 0x524   :  { %v955_v42 = vpop.f32.mrb[5].mxu1 }
 0x525   :  { %v956_v45 = vadd.f32 %v955_v42, %v954_v41 }
 0x527   :  { %885 = vmatmul.mubr.msk.f32.vlgmr.msra.gmra.mrb[6].mxu1 %vm563_vm3, %v956_v45 }
 0x528   :  { %1160 = vmatpush1.bf16.msra.mxu1 %v1159_v44  ;;  %848 = vmatprep.mubr.f32.mxu1 %v1305_v46 }
 0x529   :  { %1162 = vmatprep.subr.bf16.mxu1 %v1161_v47 }
 0x52c   :  { %1164 = vmatpush1.bf16.msra.mxu1 %v1163_v50 }
 0x52f   :  { %886 = vmatmul.mubr.msk.f32.vlgmr.msra.gmra.mrb[8].mxu1 %vm563_vm3, %v92_v51 }
 0x5fa   :  { %v633_v46 = vpop.f32.mrb[6].mxu1 }
 0x5fb   :  { %v634_v57 = vadd.f32 %v633_v46, %v556_v55  ;;  %v635_v58 = vpop.f32.mrb[7].mxu1 }
 0x5fc   :  { %v636_v59 = vadd.f32 %v635_v58, %v560_v56 }
 0x5fd   :  { %v769_v60 = vadd.f32 %v768_v52, %v634_v57 }
 0x5fe   :  { %v771_v61 = vadd.f32 %v770_v53, %v636_v59 }
 0x602   :  { %v850_v62 = vpop.f32.mrb[8].mxu1 }
 0x603   :  { %v855_v63 = vmul.f32 %v850_v62, %v1697_v6  ;;  %v852_v0 = vpop.f32.mrb[9].mxu1 }
 0x604   :  { %v856_v1 = vmul.f32 %v852_v0, %v1517_v43 }
 0x605   :  { %v857_v2 = vadd.f32 %v855_v63, %v769_v60 }
 0x606   :  { %v858_v3 = vadd.f32 %v856_v1, %v771_v61 }
 0x607   :  { %v861_v21 = vmul.f32 0.01, %v857_v2  ;;  %vm859_vm4 = vcmp.ge.f32.partialorder %v857_v2, 0.0 }
 0x608   :  { %v862_v20 = vmul.f32 0.01, %v858_v3  ;;  %vm860_vm5 = vcmp.ge.f32.partialorder %v858_v3, 0.0 }
 0x609   :  { %v863_v23 = vsel %vm859_vm4, %v857_v2, %v861_v21 }
 0x60a   :  { %v864_v4 = vsel %vm860_vm5, %v858_v3, %v862_v20  ;;  %865 = vst [vmem:[#allocation10] sm:$0xff] %v863_v23 }
 0x60b   :  { %866 = vst [vmem:[#allocation10 + $0x8] sm:$0xff] %v864_v4 }
 0x60c   :  { %1280 = shalt.err (!%p1277_p8)
}
 0x60d   :  { %s1281_s1 = scalar_lea.hbm %s1876_s11, 256 }
 0x60e   :  { %p1282_p9 = scmp.ne.s32.totalorder %s1876_s11, %s1281_s1  ;;  %p1285_p10 = scmp.lt.u32.totalorder %s1281_s1, %s1876_s11 }
 0x610   :  { %p1287_p11 = pnand %p1285_p10, %p1282_p9 }
 0x612   :  { %1290 = shalt.err (!%p1287_p11)
}
 0x613   :  { %876 = dma.vmem_to_hbm [thread:$0]  %s874_s9, 256, %s1876_s11, [#allocation4]  }
 0x614   :  { %1297 = dma.done.wait [#allocation4], 256  }
 0x615   :  { %1298 = vsyncadd [#allocation4], 4294967040 }
 0x616   :  { %880 = vsyncpa [#allocation3], 1 }
 0x617   :  { %881 = vsyncpa [#allocation6], 1 }
 0x618   :  { %882 = vsyncpa [#allocation9], 1 }
 0x619   :  { %883 = vsyncpa [#allocation4], 1 }

</bundles_post_ra>
